<compile_context>
chip_gen: v7x
topology: tpu7x:2x2x1
jax: 0.10.0
libtpu: 0.0.40
codegen_flags: <defaults>
</compile_context>

<pallas_src>
import functools

import jax
import jax.numpy as jnp
from jax.experimental import pallas as pl
from jax.experimental.pallas import tpu as pltpu

# ---- shapes implied by CNNnet.__init__ / forward ----------------------------
IN_CH = 4            # conv1 in_channels
L_IN = 17            # chosen input length
C1, K1 = 16, 2       # conv1: 4 -> 16, k=2, s=1, p=0
C2 = 32              # conv2: 16 -> 32, k=1, s=2, p=0
C3 = 64              # conv3: 32 -> 64, k=1, s=2, p=0
L1, L2, L3 = 16, 8, 4
NPOS = L3            # only 4 length positions feed the fc head
NUM = C3 * L3        # 256  ("num" in the torch code)
F1, F2, F3, F4 = NUM // 2, NUM // 8, NUM // 64, 2   # 128, 32, 4, 2
FEAT = 2 * IN_CH * NPOS                              # 32 gathered input features
NEG_SLOPE = 0.01     # F.leaky_relu default
BN_EPS = 1e-5
DEFAULT_TB = 256     # batch tile (samples per grid step)


def _round_up(n, m):
    return ((n + m - 1) // m) * m


# ---- kernel ------------------------------------------------------------------
def cnnnet_kernel(x_ref,
                  w1_ref, b1_ref, w2_ref, b2_ref, w3_ref, b3_ref,
                  fc1w_ref, fc1b_ref, fc2w_ref, fc2b_ref,
                  fc3w_ref, fc3b_ref, fc4w_ref, fc4b_ref,
                  out_ref):
    f32 = jnp.float32
    bf16 = jnp.bfloat16

    def leaky(v):
        return jnp.where(v > 0, v, NEG_SLOPE * v)

    def dense(act_f32, w_ref, b_ref):
        # bf16 MXU operands, f32 accumulate; bias add in f32 on the VPU.
        return jnp.dot(act_f32.astype(bf16), w_ref[...],
                       preferred_element_type=f32) + b_ref[...]

    x = x_ref[...]                                            # (TB, 32), bf16

    # conv1 (BN(4) folded, block-diagonal over 4 positions) + ReLU
    y1 = jnp.maximum(
        jnp.dot(x, w1_ref[...], preferred_element_type=f32) + b1_ref[...], 0.0)   # (TB, 64)
    # conv2 + BN(32) folded + ReLU
    y2 = jnp.maximum(dense(y1, w2_ref, b2_ref), 0.0)          # (TB, 128)
    # conv3 + BN(64) folded + ReLU
    y3 = jnp.maximum(dense(y2, w3_ref, b3_ref), 0.0)          # (TB, 256)

    # fc chain (torch channel-major flatten folded into fc1w)
    h = leaky(dense(y3, fc1w_ref, fc1b_ref))                  # (TB, 128)
    # Dropout(p=0.4): identity at inference.
    h = leaky(dense(h, fc2w_ref, fc2b_ref))                   # (TB, 32)
    h = leaky(dense(h, fc3w_ref, fc3b_ref))                   # (TB, 4)
    logits = dense(h, fc4w_ref, fc4b_ref)                     # (TB, 2)

    # softmax over dim=1
    m = jnp.max(logits, axis=1, keepdims=True)
    e = jnp.exp(logits - m)
    out_ref[...] = (e / jnp.sum(e, axis=1, keepdims=True)).astype(out_ref.dtype)


# ---- deterministic parameter construction (synthetic, no checkpoint) ---------
def init_raw_params(key):
    """Raw torch-layout parameters (f32)."""
    ks = jax.random.split(key, 17)

    def bn(k, c):
        k0, k1, k2, k3 = jax.random.split(k, 4)
        gamma = jax.random.uniform(k0, (c,), minval=0.5, maxval=1.5)
        beta = 0.1 * jax.random.normal(k1, (c,))
        mean = 0.1 * jax.random.normal(k2, (c,))
        var = jax.random.uniform(k3, (c,), minval=0.5, maxval=1.5)
        scale = gamma / jnp.sqrt(var + BN_EPS)
        shift = beta - mean * scale
        return scale, shift

    raw = {}
    raw["bn0_s"], raw["bn0_t"] = bn(ks[0], IN_CH)
    raw["w1"] = 0.2 * jax.random.normal(ks[1], (C1, IN_CH, K1))
    raw["b1"] = 0.1 * jax.random.normal(ks[2], (C1,))
    raw["w2"] = 0.2 * jax.random.normal(ks[3], (C2, C1))       # kernel_size=1 squeezed
    raw["b2"] = 0.1 * jax.random.normal(ks[4], (C2,))
    raw["bn2_s"], raw["bn2_t"] = bn(ks[5], C2)
    raw["w3"] = 0.2 * jax.random.normal(ks[6], (C3, C2))       # kernel_size=1 squeezed
    raw["b3"] = 0.1 * jax.random.normal(ks[7], (C3,))
    raw["bn3_s"], raw["bn3_t"] = bn(ks[8], C3)
    raw["fc1w"] = 0.05 * jax.random.normal(ks[9], (F1, NUM))
    raw["fc1b"] = 0.1 * jax.random.normal(ks[10], (F1,))
    raw["fc2w"] = 0.05 * jax.random.normal(ks[11], (F2, F1))
    raw["fc2b"] = 0.1 * jax.random.normal(ks[12], (F2,))
    raw["fc3w"] = 0.05 * jax.random.normal(ks[13], (F3, F2))
    raw["fc3b"] = 0.1 * jax.random.normal(ks[14], (F3,))
    raw["fc4w"] = 0.05 * jax.random.normal(ks[15], (F4, F3))
    raw["fc4b"] = 0.1 * jax.random.normal(ks[16], (F4,))
    return {k: v.astype(jnp.float32) for k, v in raw.items()}


def fold_params(raw, matmul_dtype=jnp.bfloat16):
    """Fold eval-mode BN into conv weights, block-diagonalize the convs over the
    4 surviving length positions, and fold the torch channel-major flatten into
    fc1's weight.  Returns the kernel parameter tuple."""
    s0, t0 = raw["bn0_s"], raw["bn0_t"]
    w1, b1 = raw["w1"], raw["b1"]
    w1a = (w1[:, :, 0] * s0[None, :]).T                        # (4, 16)
    w1b = (w1[:, :, 1] * s0[None, :]).T                        # (4, 16)
    b1f = b1 + (w1[:, :, 0] + w1[:, :, 1]) @ t0                # (16,)
    w1blk = jnp.concatenate([w1a, w1b], axis=0)                # (8, 16)

    s2, t2 = raw["bn2_s"], raw["bn2_t"]
    w2f = (raw["w2"] * s2[:, None]).T                          # (16, 32)
    b2f = raw["b2"] * s2 + t2

    s3, t3 = raw["bn3_s"], raw["bn3_t"]
    w3f = (raw["w3"] * s3[:, None]).T                          # (32, 64)
    b3f = raw["b3"] * s3 + t3

    eye = jnp.eye(NPOS, dtype=jnp.float32)
    w1bd = jnp.kron(eye, w1blk)                                # (32, 64)
    w2bd = jnp.kron(eye, w2f)                                  # (64, 128)
    w3bd = jnp.kron(eye, w3f)                                  # (128, 256)
    b1bd = jnp.tile(b1f, NPOS)[None, :]                        # (1, 64)
    b2bd = jnp.tile(b2f, NPOS)[None, :]                        # (1, 128)
    b3bd = jnp.tile(b3f, NPOS)[None, :]                        # (1, 256)

    # torch flatten index = c*L3 + l ; kernel activation index = l*C3 + c
    fc1w = raw["fc1w"].reshape(F1, C3, L3).transpose(2, 1, 0).reshape(NUM, F1)  # (256, 128)
    fc2w = raw["fc2w"].T                                       # (128, 32)
    fc3w = raw["fc3w"].T                                       # (32, 4)
    fc4w = raw["fc4w"].T                                       # (4, 2)

    weights = [w1bd, w2bd, w3bd, fc1w, fc2w, fc3w, fc4w]
    biases = [b1bd, b2bd, b3bd,
              raw["fc1b"][None, :], raw["fc2b"][None, :],
              raw["fc3b"][None, :], raw["fc4b"][None, :]]

    params = []
    for w, b in zip(weights, biases):
        params.append(w.astype(matmul_dtype))
        params.append(b.astype(jnp.float32))
    return tuple(params)


# ---- wrapper ------------------------------------------------------------------
@functools.partial(jax.jit, static_argnames=("tb",))
def _forward_impl(x_ncl, params, tb):
    B = x_ncl.shape[0]
    x = x_ncl.astype(jnp.float32)                              # (B, 4, 17), torch NCL

    # Gather the 8 input columns that reach the output (conv1 positions 0,4,8,12)
    xa = jnp.transpose(x[:, :, 0:4 * NPOS:4], (0, 2, 1))       # (B, 4, 4) -> pos 0,4,8,12
    xb = jnp.transpose(x[:, :, 1:4 * NPOS + 1:4], (0, 2, 1))   # (B, 4, 4) -> pos 1,5,9,13
    x_feat = jnp.concatenate([xa, xb], axis=-1).reshape(B, FEAT)   # (B, 32), idx = l*8 + c

    bp = _round_up(B, tb)
    if bp != B:
        x_feat = jnp.pad(x_feat, ((0, bp - B), (0, 0)))
    x_feat = x_feat.astype(jnp.bfloat16)

    in_specs = [pl.BlockSpec((tb, FEAT), lambda i: (i, 0))]
    for p in params:
        nd = p.ndim
        in_specs.append(pl.BlockSpec(p.shape, lambda i, _nd=nd: (0,) * _nd))

    out = pl.pallas_call(
        cnnnet_kernel,
        grid_spec=pltpu.PrefetchScalarGridSpec(
            num_scalar_prefetch=0,
            grid=(bp // tb,),
            in_specs=in_specs,
            out_specs=pl.BlockSpec((tb, F4), lambda i: (i, 0)),
        ),
        out_shape=jax.ShapeDtypeStruct((bp, F4), jnp.float32),
        compiler_params=pltpu.CompilerParams(
            dimension_semantics=("parallel",)),
    )(x_feat, *params)
    return out[:B]


def cnnnet_forward(x_ncl, params, tb=None):
    if tb is None:
        # Full batch tile up to 256 samples; keep >=2 grid steps when possible
        # (v7x megacore) and a multiple of 16 (bf16 sublane packing).
        half = (x_ncl.shape[0] + 1) // 2
        tb = min(DEFAULT_TB, _round_up(max(1, half), 16))
    return _forward_impl(x_ncl, tuple(params), tb)


# ---- pure-JAX reference (literal eval-mode torch forward, f32) ----------------
def cnnnet_reference(x_ncl, raw):
    x = x_ncl.astype(jnp.float32)                              # (B, 4, 17)
    x = x * raw["bn0_s"][None, :, None] + raw["bn0_t"][None, :, None]
    # conv1: k=2, s=1
    y1 = sum(jnp.einsum("bcl,oc->bol", x[:, :, k:k + L1], raw["w1"][:, :, k])
             for k in range(K1)) + raw["b1"][None, :, None]
    y1 = jnp.maximum(y1, 0.0)                                  # (B, 16, 16)
    # conv2: k=1, s=2 ; BN(32); ReLU
    y2 = jnp.einsum("bcl,oc->bol", y1[:, :, ::2], raw["w2"]) + raw["b2"][None, :, None]
    y2 = y2 * raw["bn2_s"][None, :, None] + raw["bn2_t"][None, :, None]
    y2 = jnp.maximum(y2, 0.0)                                  # (B, 32, 8)
    # conv3: k=1, s=2 ; BN(64); ReLU
    y3 = jnp.einsum("bcl,oc->bol", y2[:, :, ::2], raw["w3"]) + raw["b3"][None, :, None]
    y3 = y3 * raw["bn3_s"][None, :, None] + raw["bn3_t"][None, :, None]
    y3 = jnp.maximum(y3, 0.0)                                  # (B, 64, 4)
    h = y3.reshape(y3.shape[0], -1)                            # channel-major flatten
    leaky = lambda v: jnp.where(v > 0, v, NEG_SLOPE * v)
    h = leaky(h @ raw["fc1w"].T + raw["fc1b"])
    h = leaky(h @ raw["fc2w"].T + raw["fc2b"])
    h = leaky(h @ raw["fc3w"].T + raw["fc3b"])
    z = h @ raw["fc4w"].T + raw["fc4b"]
    return jax.nn.softmax(z, axis=1)


if __name__ == "__main__":
    key = jax.random.PRNGKey(0)
    pkey, xkey1, xkey2 = jax.random.split(key, 3)
    raw = init_raw_params(pkey)
    params = fold_params(raw)

    # small demo batch, torch NCL layout (B, 4, 17)
    B = 2
    x = jax.random.normal(xkey1, (B, IN_CH, L_IN), dtype=jnp.float32)
    probs = jax.block_until_ready(cnnnet_forward(x, params))
    ref = cnnnet_reference(x, raw)
    assert probs.shape == (B, F4)
    assert bool(jnp.all(jnp.isfinite(probs)))
    assert bool(jnp.allclose(jnp.sum(probs, axis=1), 1.0, atol=1e-5))
    assert bool(jnp.allclose(probs, ref, atol=3e-2))           # bf16-weight tolerance

    # exercise the batch-tiled + padded path (B not a multiple of the tile)
    B2 = 37
    x2 = jax.random.normal(xkey2, (B2, IN_CH, L_IN), dtype=jnp.float32)
    probs2 = jax.block_until_ready(cnnnet_forward(x2, params))
    ref2 = cnnnet_reference(x2, raw)
    assert probs2.shape == (B2, F4)
    assert bool(jnp.all(jnp.isfinite(probs2)))
    assert bool(jnp.allclose(probs2, ref2, atol=3e-2))

    print("KERNEL_OK")
</pallas_src>

<mosaic_0001>
module attributes {stable_mosaic.version = 11 : i64} {
  func.func @cnnnet_kernel(%arg0: i32, %arg1: memref<16x32xbf16, #tpu.memory_space<vmem>>, %arg2: memref<32x64xbf16, #tpu.memory_space<vmem>>, %arg3: memref<1x64xf32, #tpu.memory_space<vmem>>, %arg4: memref<64x128xbf16, #tpu.memory_space<vmem>>, %arg5: memref<1x128xf32, #tpu.memory_space<vmem>>, %arg6: memref<128x256xbf16, #tpu.memory_space<vmem>>, %arg7: memref<1x256xf32, #tpu.memory_space<vmem>>, %arg8: memref<256x128xbf16, #tpu.memory_space<vmem>>, %arg9: memref<1x128xf32, #tpu.memory_space<vmem>>, %arg10: memref<128x32xbf16, #tpu.memory_space<vmem>>, %arg11: memref<1x32xf32, #tpu.memory_space<vmem>>, %arg12: memref<32x4xbf16, #tpu.memory_space<vmem>>, %arg13: memref<1x4xf32, #tpu.memory_space<vmem>>, %arg14: memref<4x2xbf16, #tpu.memory_space<vmem>>, %arg15: memref<1x2xf32, #tpu.memory_space<vmem>>, %arg16: memref<16x2xf32, #tpu.memory_space<vmem>>) attributes {dimension_semantics = [#tpu.dimension_semantics<parallel>], iteration_bounds = array<i64: 1>, scalar_prefetch = 0 : i64, scratch_operands = 0 : i64, tpu.core_type = #tpu.core_type<tc>, window_params = [{transform_indices = @transform_0, window_bounds = array<i64: 16, 32>}, {pipeline_mode = #tpu.pipeline_mode<synchronous>, transform_indices = @transform_1, window_bounds = array<i64: 32, 64>}, {pipeline_mode = #tpu.pipeline_mode<synchronous>, transform_indices = @transform_2, window_bounds = array<i64: 1, 64>}, {pipeline_mode = #tpu.pipeline_mode<synchronous>, transform_indices = @transform_3, window_bounds = array<i64: 64, 128>}, {pipeline_mode = #tpu.pipeline_mode<synchronous>, transform_indices = @transform_4, window_bounds = array<i64: 1, 128>}, {pipeline_mode = #tpu.pipeline_mode<synchronous>, transform_indices = @transform_5, window_bounds = array<i64: 128, 256>}, {pipeline_mode = #tpu.pipeline_mode<synchronous>, transform_indices = @transform_6, window_bounds = array<i64: 1, 256>}, {pipeline_mode = #tpu.pipeline_mode<synchronous>, transform_indices = @transform_7, window_bounds = array<i64: 256, 128>}, {pipeline_mode = #tpu.pipeline_mode<synchronous>, transform_indices = @transform_8, window_bounds = array<i64: 1, 128>}, {pipeline_mode = #tpu.pipeline_mode<synchronous>, transform_indices = @transform_9, window_bounds = array<i64: 128, 32>}, {pipeline_mode = #tpu.pipeline_mode<synchronous>, transform_indices = @transform_10, window_bounds = array<i64: 1, 32>}, {pipeline_mode = #tpu.pipeline_mode<synchronous>, transform_indices = @transform_11, window_bounds = array<i64: 32, 4>}, {pipeline_mode = #tpu.pipeline_mode<synchronous>, transform_indices = @transform_12, window_bounds = array<i64: 1, 4>}, {pipeline_mode = #tpu.pipeline_mode<synchronous>, transform_indices = @transform_13, window_bounds = array<i64: 4, 2>}, {pipeline_mode = #tpu.pipeline_mode<synchronous>, transform_indices = @transform_14, window_bounds = array<i64: 1, 2>}, {transform_indices = @transform_15, window_bounds = array<i64: 16, 2>}]} {
    %c0 = arith.constant 0 : index
    %c0_0 = arith.constant 0 : index
    %0 = vector.load %arg1[%c0, %c0_0] : memref<16x32xbf16, #tpu.memory_space<vmem>>, vector<16x32xbf16>
    %c0_1 = arith.constant 0 : index
    %c0_2 = arith.constant 0 : index
    %1 = vector.load %arg2[%c0_1, %c0_2] : memref<32x64xbf16, #tpu.memory_space<vmem>>, vector<32x64xbf16>
    %cst = arith.constant dense<0.000000e+00> : vector<16x64xf32>
    %2 = tpu.matmul %0, %1, %cst {dimension_numbers = #tpu.dot_dimension_numbers<[1], [0], [0], [1], [0, 0, 1, 1], [], []>} : vector<16x32xbf16>, vector<32x64xbf16>, vector<16x64xf32> -> vector<16x64xf32>
    %c0_3 = arith.constant 0 : index
    %c0_4 = arith.constant 0 : index
    %3 = vector.load %arg3[%c0_3, %c0_4] : memref<1x64xf32, #tpu.memory_space<vmem>>, vector<1x64xf32>
    %4 = vector.broadcast %3 : vector<1x64xf32> to vector<16x64xf32>
    %5 = arith.addf %2, %4 : vector<16x64xf32>
    %cst_5 = arith.constant 0.000000e+00 : f32
    %6 = vector.broadcast %cst_5 : f32 to vector<16x64xf32>
    %7 = arith.maximumf %5, %6 : vector<16x64xf32>
    %8 = arith.truncf %7 : vector<16x64xf32> to vector<16x64xbf16>
    %c0_6 = arith.constant 0 : index
    %c0_7 = arith.constant 0 : index
    %9 = vector.load %arg4[%c0_6, %c0_7] : memref<64x128xbf16, #tpu.memory_space<vmem>>, vector<64x128xbf16>
    %cst_8 = arith.constant dense<0.000000e+00> : vector<16x128xf32>
    %10 = tpu.matmul %8, %9, %cst_8 {dimension_numbers = #tpu.dot_dimension_numbers<[1], [0], [0], [1], [0, 0, 1, 1], [], []>} : vector<16x64xbf16>, vector<64x128xbf16>, vector<16x128xf32> -> vector<16x128xf32>
    %c0_9 = arith.constant 0 : index
    %c0_10 = arith.constant 0 : index
    %11 = vector.load %arg5[%c0_9, %c0_10] : memref<1x128xf32, #tpu.memory_space<vmem>>, vector<1x128xf32>
    %12 = vector.broadcast %11 : vector<1x128xf32> to vector<16x128xf32>
    %13 = arith.addf %10, %12 : vector<16x128xf32>
    %cst_11 = arith.constant 0.000000e+00 : f32
    %14 = vector.broadcast %cst_11 : f32 to vector<16x128xf32>
    %15 = arith.maximumf %13, %14 : vector<16x128xf32>
    %16 = arith.truncf %15 : vector<16x128xf32> to vector<16x128xbf16>
    %c0_12 = arith.constant 0 : index
    %c0_13 = arith.constant 0 : index
    %17 = vector.load %arg6[%c0_12, %c0_13] : memref<128x256xbf16, #tpu.memory_space<vmem>>, vector<128x256xbf16>
    %cst_14 = arith.constant dense<0.000000e+00> : vector<16x256xf32>
    %18 = tpu.matmul %16, %17, %cst_14 {dimension_numbers = #tpu.dot_dimension_numbers<[1], [0], [0], [1], [0, 0, 1, 1], [], []>} : vector<16x128xbf16>, vector<128x256xbf16>, vector<16x256xf32> -> vector<16x256xf32>
    %c0_15 = arith.constant 0 : index
    %c0_16 = arith.constant 0 : index
    %19 = vector.load %arg7[%c0_15, %c0_16] : memref<1x256xf32, #tpu.memory_space<vmem>>, vector<1x256xf32>
    %20 = vector.broadcast %19 : vector<1x256xf32> to vector<16x256xf32>
    %21 = arith.addf %18, %20 : vector<16x256xf32>
    %cst_17 = arith.constant 0.000000e+00 : f32
    %22 = vector.broadcast %cst_17 : f32 to vector<16x256xf32>
    %23 = arith.maximumf %21, %22 : vector<16x256xf32>
    %24 = arith.truncf %23 : vector<16x256xf32> to vector<16x256xbf16>
    %c0_18 = arith.constant 0 : index
    %c0_19 = arith.constant 0 : index
    %25 = vector.load %arg8[%c0_18, %c0_19] : memref<256x128xbf16, #tpu.memory_space<vmem>>, vector<256x128xbf16>
    %cst_20 = arith.constant dense<0.000000e+00> : vector<16x128xf32>
    %26 = tpu.matmul %24, %25, %cst_20 {dimension_numbers = #tpu.dot_dimension_numbers<[1], [0], [0], [1], [0, 0, 1, 1], [], []>} : vector<16x256xbf16>, vector<256x128xbf16>, vector<16x128xf32> -> vector<16x128xf32>
    %c0_21 = arith.constant 0 : index
    %c0_22 = arith.constant 0 : index
    %27 = vector.load %arg9[%c0_21, %c0_22] : memref<1x128xf32, #tpu.memory_space<vmem>>, vector<1x128xf32>
    %28 = vector.broadcast %27 : vector<1x128xf32> to vector<16x128xf32>
    %29 = arith.addf %26, %28 : vector<16x128xf32>
    %cst_23 = arith.constant 0.000000e+00 : f32
    %30 = vector.broadcast %cst_23 : f32 to vector<16x128xf32>
    %31 = arith.cmpf ogt, %29, %30 : vector<16x128xf32>
    %cst_24 = arith.constant 0.00999999977 : f32
    %32 = vector.broadcast %cst_24 : f32 to vector<16x128xf32>
    %33 = arith.mulf %32, %29 : vector<16x128xf32>
    %34 = arith.select %31, %29, %33 : vector<16x128xi1>, vector<16x128xf32>
    %35 = arith.truncf %34 : vector<16x128xf32> to vector<16x128xbf16>
    %c0_25 = arith.constant 0 : index
    %c0_26 = arith.constant 0 : index
    %36 = vector.load %arg10[%c0_25, %c0_26] : memref<128x32xbf16, #tpu.memory_space<vmem>>, vector<128x32xbf16>
    %cst_27 = arith.constant dense<0.000000e+00> : vector<16x32xf32>
    %37 = tpu.matmul %35, %36, %cst_27 {dimension_numbers = #tpu.dot_dimension_numbers<[1], [0], [0], [1], [0, 0, 1, 1], [], []>} : vector<16x128xbf16>, vector<128x32xbf16>, vector<16x32xf32> -> vector<16x32xf32>
    %c0_28 = arith.constant 0 : index
    %c0_29 = arith.constant 0 : index
    %38 = vector.load %arg11[%c0_28, %c0_29] : memref<1x32xf32, #tpu.memory_space<vmem>>, vector<1x32xf32>
    %39 = vector.broadcast %38 : vector<1x32xf32> to vector<16x32xf32>
    %40 = arith.addf %37, %39 : vector<16x32xf32>
    %cst_30 = arith.constant 0.000000e+00 : f32
    %41 = vector.broadcast %cst_30 : f32 to vector<16x32xf32>
    %42 = arith.cmpf ogt, %40, %41 : vector<16x32xf32>
    %cst_31 = arith.constant 0.00999999977 : f32
    %43 = vector.broadcast %cst_31 : f32 to vector<16x32xf32>
    %44 = arith.mulf %43, %40 : vector<16x32xf32>
    %45 = arith.select %42, %40, %44 : vector<16x32xi1>, vector<16x32xf32>
    %46 = arith.truncf %45 : vector<16x32xf32> to vector<16x32xbf16>
    %c0_32 = arith.constant 0 : index
    %c0_33 = arith.constant 0 : index
    %47 = vector.load %arg12[%c0_32, %c0_33] : memref<32x4xbf16, #tpu.memory_space<vmem>>, vector<32x4xbf16>
    %cst_34 = arith.constant dense<0.000000e+00> : vector<16x4xf32>
    %48 = tpu.matmul %46, %47, %cst_34 {dimension_numbers = #tpu.dot_dimension_numbers<[1], [0], [0], [1], [0, 0, 1, 1], [], []>} : vector<16x32xbf16>, vector<32x4xbf16>, vector<16x4xf32> -> vector<16x4xf32>
    %c0_35 = arith.constant 0 : index
    %c0_36 = arith.constant 0 : index
    %49 = vector.load %arg13[%c0_35, %c0_36] : memref<1x4xf32, #tpu.memory_space<vmem>>, vector<1x4xf32>
    %50 = vector.broadcast %49 : vector<1x4xf32> to vector<16x4xf32>
    %51 = arith.addf %48, %50 : vector<16x4xf32>
    %cst_37 = arith.constant 0.000000e+00 : f32
    %52 = vector.broadcast %cst_37 : f32 to vector<16x4xf32>
    %53 = arith.cmpf ogt, %51, %52 : vector<16x4xf32>
    %cst_38 = arith.constant 0.00999999977 : f32
    %54 = vector.broadcast %cst_38 : f32 to vector<16x4xf32>
    %55 = arith.mulf %54, %51 : vector<16x4xf32>
    %56 = arith.select %53, %51, %55 : vector<16x4xi1>, vector<16x4xf32>
    %57 = arith.truncf %56 : vector<16x4xf32> to vector<16x4xbf16>
    %c0_39 = arith.constant 0 : index
    %c0_40 = arith.constant 0 : index
    %58 = vector.load %arg14[%c0_39, %c0_40] : memref<4x2xbf16, #tpu.memory_space<vmem>>, vector<4x2xbf16>
    %cst_41 = arith.constant dense<0.000000e+00> : vector<16x2xf32>
    %59 = tpu.matmul %57, %58, %cst_41 {dimension_numbers = #tpu.dot_dimension_numbers<[1], [0], [0], [1], [0, 0, 1, 1], [], []>} : vector<16x4xbf16>, vector<4x2xbf16>, vector<16x2xf32> -> vector<16x2xf32>
    %c0_42 = arith.constant 0 : index
    %c0_43 = arith.constant 0 : index
    %60 = vector.load %arg15[%c0_42, %c0_43] : memref<1x2xf32, #tpu.memory_space<vmem>>, vector<1x2xf32>
    %61 = vector.broadcast %60 : vector<1x2xf32> to vector<16x2xf32>
    %62 = arith.addf %59, %61 : vector<16x2xf32>
    %cst_44 = arith.constant dense<0xFF800000> : vector<16xf32>
    %63 = vector.multi_reduction <maximumf>, %62, %cst_44 [1] : vector<16x2xf32> to vector<16xf32>
    %64 = vector.shape_cast %63 : vector<16xf32> to vector<16x1xf32>
    %65 = vector.broadcast %64 : vector<16x1xf32> to vector<16x2xf32>
    %66 = arith.subf %62, %65 : vector<16x2xf32>
    %67 = math.exp %66 : vector<16x2xf32>
    %cst_45 = arith.constant dense<0.000000e+00> : vector<16xf32>
    %68 = vector.multi_reduction <add>, %67, %cst_45 [1] : vector<16x2xf32> to vector<16xf32>
    %69 = vector.shape_cast %68 : vector<16xf32> to vector<16x1xf32>
    %70 = vector.broadcast %69 : vector<16x1xf32> to vector<16x2xf32>
    %71 = arith.divf %67, %70 : vector<16x2xf32>
    %c0_46 = arith.constant 0 : index
    %c0_47 = arith.constant 0 : index
    %72 = vector.load %arg16[%c0_46, %c0_47] : memref<16x2xf32, #tpu.memory_space<vmem>>, vector<16x2xf32>
    tpu.vector_store %arg16[%c0_46, %c0_47], %71 {strides = array<i32>} : memref<16x2xf32, #tpu.memory_space<vmem>>, vector<16x2xf32>,
    return
  }
  func.func @transform_0(%arg0: i32) -> (i32, i32) {
    %c0_i32 = arith.constant 0 : i32
    %c0_i32_0 = arith.constant 0 : i32
    return %arg0, %c0_i32 : i32, i32
  }
  func.func @transform_1(%arg0: i32) -> (i32, i32) {
    %c0_i32 = arith.constant 0 : i32
    %c0_i32_0 = arith.constant 0 : i32
    %c0_i32_1 = arith.constant 0 : i32
    return %c0_i32, %c0_i32_0 : i32, i32
  }
  func.func @transform_2(%arg0: i32) -> (i32, i32) {
    %c0_i32 = arith.constant 0 : i32
    %c0_i32_0 = arith.constant 0 : i32
    %c0_i32_1 = arith.constant 0 : i32
    return %c0_i32, %c0_i32_0 : i32, i32
  }
  func.func @transform_3(%arg0: i32) -> (i32, i32) {
    %c0_i32 = arith.constant 0 : i32
    %c0_i32_0 = arith.constant 0 : i32
    %c0_i32_1 = arith.constant 0 : i32
    return %c0_i32, %c0_i32_0 : i32, i32
  }
  func.func @transform_4(%arg0: i32) -> (i32, i32) {
    %c0_i32 = arith.constant 0 : i32
    %c0_i32_0 = arith.constant 0 : i32
    %c0_i32_1 = arith.constant 0 : i32
    return %c0_i32, %c0_i32_0 : i32, i32
  }
  func.func @transform_5(%arg0: i32) -> (i32, i32) {
    %c0_i32 = arith.constant 0 : i32
    %c0_i32_0 = arith.constant 0 : i32
    %c0_i32_1 = arith.constant 0 : i32
    return %c0_i32, %c0_i32_0 : i32, i32
  }
  func.func @transform_6(%arg0: i32) -> (i32, i32) {
    %c0_i32 = arith.constant 0 : i32
    %c0_i32_0 = arith.constant 0 : i32
    %c0_i32_1 = arith.constant 0 : i32
    return %c0_i32, %c0_i32_0 : i32, i32
  }
  func.func @transform_7(%arg0: i32) -> (i32, i32) {
    %c0_i32 = arith.constant 0 : i32
    %c0_i32_0 = arith.constant 0 : i32
    %c0_i32_1 = arith.constant 0 : i32
    return %c0_i32, %c0_i32_0 : i32, i32
  }
  func.func @transform_8(%arg0: i32) -> (i32, i32) {
    %c0_i32 = arith.constant 0 : i32
    %c0_i32_0 = arith.constant 0 : i32
    %c0_i32_1 = arith.constant 0 : i32
    return %c0_i32, %c0_i32_0 : i32, i32
  }
  func.func @transform_9(%arg0: i32) -> (i32, i32) {
    %c0_i32 = arith.constant 0 : i32
    %c0_i32_0 = arith.constant 0 : i32
    %c0_i32_1 = arith.constant 0 : i32
    return %c0_i32, %c0_i32_0 : i32, i32
  }
  func.func @transform_10(%arg0: i32) -> (i32, i32) {
    %c0_i32 = arith.constant 0 : i32
    %c0_i32_0 = arith.constant 0 : i32
    %c0_i32_1 = arith.constant 0 : i32
    return %c0_i32, %c0_i32_0 : i32, i32
  }
  func.func @transform_11(%arg0: i32) -> (i32, i32) {
    %c0_i32 = arith.constant 0 : i32
    %c0_i32_0 = arith.constant 0 : i32
    %c0_i32_1 = arith.constant 0 : i32
    return %c0_i32, %c0_i32_0 : i32, i32
  }
  func.func @transform_12(%arg0: i32) -> (i32, i32) {
    %c0_i32 = arith.constant 0 : i32
    %c0_i32_0 = arith.constant 0 : i32
    %c0_i32_1 = arith.constant 0 : i32
    return %c0_i32, %c0_i32_0 : i32, i32
  }
  func.func @transform_13(%arg0: i32) -> (i32, i32) {
    %c0_i32 = arith.constant 0 : i32
    %c0_i32_0 = arith.constant 0 : i32
    %c0_i32_1 = arith.constant 0 : i32
    return %c0_i32, %c0_i32_0 : i32, i32
  }
  func.func @transform_14(%arg0: i32) -> (i32, i32) {
    %c0_i32 = arith.constant 0 : i32
    %c0_i32_0 = arith.constant 0 : i32
    %c0_i32_1 = arith.constant 0 : i32
    return %c0_i32, %c0_i32_0 : i32, i32
  }
  func.func @transform_15(%arg0: i32) -> (i32, i32) {
    %c0_i32 = arith.constant 0 : i32
    %c0_i32_0 = arith.constant 0 : i32
    return %arg0, %c0_i32 : i32, i32
  }
}

</mosaic_0001>

<bundles_post_ra>
// kernel: _forward_impl.1
= control target key start
LH: loop header
LB: loop body
LE: loop exit
PB: predicated region body
PF: predicated region fallthrough
CT: control target
= control target key end

     0   :  { %20 = vsyncpa [#allocation3], 0  ;;  %s1102_s18 = smov [#allocation2]   ;;  %s1364_s0 = inlined_call_operand.vmem [shape: bf16[16,32], index: 0, kind: input, shape index: {}]   ;;  %s1365_s1 = inlined_call_operand.vmem [shape: bf16[32,64], index: 1, kind: input, shape index: {}]   ;;  %s1366_s2 = inlined_call_operand.vmem [shape: f32[1,64], index: 2, kind: input, shape index: {}]   ;;  %s1367_s3 = inlined_call_operand.vmem [shape: bf16[64,128], index: 3, kind: input, shape index: {}]   ;;  %s1368_s4 = inlined_call_operand.vmem [shape: f32[1,128], index: 4, kind: input, shape index: {}]   ;;  %s1369_s5 = inlined_call_operand.vmem [shape: bf16[128,256], index: 5, kind: input, shape index: {}]   ;;  %s1370_s6 = inlined_call_operand.vmem [shape: f32[1,256], index: 6, kind: input, shape index: {}]   ;;  %s1371_s7 = inlined_call_operand.hbm [shape: bf16[256,128], index: 7, kind: input, shape index: {}]   ;;  %s1372_s8 = inlined_call_operand.vmem [shape: f32[1,128], index: 8, kind: input, shape index: {}]   ;;  %s1373_s9 = inlined_call_operand.vmem [shape: bf16[128,32], index: 9, kind: input, shape index: {}]   ;;  %s1374_s10 = inlined_call_operand.vmem [shape: f32[1,32], index: 10, kind: input, shape index: {}]   ;;  %s1375_s11 = inlined_call_operand.vmem [shape: bf16[32,4], index: 11, kind: input, shape index: {}]   ;;  %s1376_s12 = inlined_call_operand.vmem [shape: f32[1,4], index: 12, kind: input, shape index: {}]   ;;  %s1377_s13 = inlined_call_operand.vmem [shape: bf16[4,2], index: 13, kind: input, shape index: {}]   ;;  %s1378_s14 = inlined_call_operand.vmem [shape: f32[1,2], index: 14, kind: input, shape index: {}]   ;;  %s1379_s15 = inlined_call_operand.vmem [shape: f32[16,2], index: 15, kind: output, shape index: {}]  }
   0x1   :  { %s40_s19 = sshll.u32 %s1102_s18, 4  ;;  %s1078_s22 = scalar_lea.hbm %s1371_s7, 2048  ;;  %s41_s19 = int_to_ptr.vmem [resolvable:$true] %s40_s19 }
   0x2   :  { %p1079_p0 = scmp.ne.s32.totalorder %s1371_s7, %s1078_s22  ;;  %p1082_p1 = scmp.lt.u32.totalorder %s1078_s22, %s1371_s7 }
   0x4   :  { %p1084_p2 = pnand %p1082_p1, %p1079_p0 }
   0x6   :  { %1087 = shalt.err (!%p1084_p2)
}
   0x7   :  { %s1088_s27 = scalar_lea.vmem %s41_s19, 2048  ;;  %p1093_p4 = scmp.lt.s32.totalorder %s41_s19, %s41_s19 }
   0x8   :  { %p1089_p3 = scmp.ne.s32.totalorder %s41_s19, %s1088_s27  ;;  %p1094_p5 = scmp.lt.s32.totalorder %s1088_s27, %s1088_s27 }
   0xa   :  { %p1095_p6 = por %p1094_p5, %p1093_p4 }
   0xc   :  { %p1096_p7 = pnand %p1095_p6, %p1089_p3 }
   0xe   :  { %1099 = shalt.err (!%p1096_p7)
}
   0xf   :  { %s1103_s28 = smov 64   ;;  %s1104_s29 = smov 4  }
  0x10   :  { %46 = dma.hbm_to_vmem [thread:$0]  %s1371_s7, 2048, %s41_s19, [#allocation3], %s1103_s28, %s1103_s28, %s1104_s29  }
  0x11   :  { %1100 = dma.done.wait [#allocation3], 2048  }
  0x12   :  { %1101 = vsyncadd [#allocation3], 4294965248  ;;  %v1105_v0 = vmov 0.0   ;;  %vm1106_vm0 = vmmov 0   ;;  %v1013_v1 = vld [vmem:[%s1365_s1] sm:$0xff]   ;;  %v1014_v2 = vld [vmem:[%s1365_s1 + $0x8] sm:$0xff]  }
  0x13   :  { %953 = vmatprep.subr.bf16.mxu0 %v1105_v0  ;;  %957 = vmatprep.mubr.msk.bf16.mxu0 %vm1106_vm0, %v1105_v0  ;;  %v1016_v3 = vld [vmem:[%s1367_s3] sm:$0xff]   ;;  %v1017_v5 = vld [vmem:[%s1367_s3 + $0x8] sm:$0xff]   ;;  %vm95_vm1 = vcmask 261120   ;;  %v1018_v6 = vld [vmem:[%s1367_s3 + $0x10] sm:$0xff]   ;;  %vm182_vm2 = vcmask 523264   ;;  %v1107_v34 = vmov 0  }
  0x14   :  { %961 = vmatprep.subr.bf16.mxu1 %v1105_v0  ;;  %969 = vmatprep.mubr.msk.bf16.mxu1 %vm1106_vm0, %v1105_v0  ;;  %v1015_v4 = vld [vmem:[%s1364_s0] sm:$0xff]   ;;  %v1019_v7 = vld [vmem:[%s1367_s3 + $0x18] sm:$0xff]   ;;  %v1046_v37 = vld [vmem:[#allocation2 + $0x48] sm:$0xff]   ;;  %vm775_vm7 = vcmask 1041408   ;;  %vm771_vm10 = vcmask 31744   ;;  %vm820_vm11 = vcmask 15360  }
  0x15   :  { %954 = vmatpush3.bf16.msra.mxu0 %v1013_v1  ;;  %962 = vmatpush3.bf16.msra.mxu1 %v1016_v3  ;;  %v1020_v8 = vld [vmem:[%s1369_s5] ss:$8 sps:$4 sm:$0xff]   ;;  %v1022_v9 = vld [vmem:[%s1369_s5 + $0x4] ss:$8 sps:$4 sm:$0xff]   ;;  %v1025_v10 = vld [vmem:[%s1369_s5 + $0x14] ss:$8 sps:$4 sm:$0xff]   ;;  %v248_v3 = vlaneseq }
  0x16   :  { %955 = vmatprep.subr.bf16.mxu0 %v1105_v0  ;;  %963 = vmatprep.subr.bf16.mxu1 %v1105_v0  ;;  %v1023_v11 = vld [vmem:[%s1369_s5 + $0x10] ss:$8 sps:$4 sm:$0xff]   ;;  %v1028_v12 = vld [vmem:[%s1369_s5 + $0x24] ss:$8 sps:$4 sm:$0xff]   ;;  %v1026_v13 = vld [vmem:[%s1369_s5 + $0x20] ss:$8 sps:$4 sm:$0xff]  }
  0x17   :  { %v1031_v14 = vld [vmem:[%s1369_s5 + $0x34] ss:$8 sps:$4 sm:$0xff]   ;;  %v1029_v15 = vld [vmem:[%s1369_s5 + $0x30] ss:$8 sps:$4 sm:$0xff]   ;;  %v1034_v16 = vld [vmem:[%s1369_s5 + $0x44] ss:$8 sps:$4 sm:$0xff]  }
  0x18   :  { %v1032_v17 = vld [vmem:[%s1369_s5 + $0x40] ss:$8 sps:$4 sm:$0xff]   ;;  %v1037_v18 = vld [vmem:[%s1369_s5 + $0x54] ss:$8 sps:$4 sm:$0xff]   ;;  %v1035_v19 = vld [vmem:[%s1369_s5 + $0x50] ss:$8 sps:$4 sm:$0xff]  }
  0x19   :  { %956 = vmatpush3.bf16.msra.mxu0 %v1014_v2  ;;  %964 = vmatpush3.bf16.msra.mxu1 %v1017_v5  ;;  %v850_v20 = vld [vmem:[%s1366_s2] ss:$0 sm:$0xff]  ;;  %v1040_v30 = vld [vmem:[%s1369_s5 + $0x64] ss:$8 sps:$4 sm:$0xff]   ;;  %v1043_v32 = vld [vmem:[%s1369_s5 + $0x74] ss:$8 sps:$4 sm:$0xff]  }
  0x1a   :  { %965 = vmatprep.subr.bf16.mxu1 %v1105_v0  ;;  %338 = vmatprep.subr.bf16.mxu0 %v1022_v9  ;;  %v1038_v31 = vld [vmem:[%s1369_s5 + $0x60] ss:$8 sps:$4 sm:$0xff]   ;;  %v1041_v33 = vld [vmem:[%s1369_s5 + $0x70] ss:$8 sps:$4 sm:$0xff]  }
  0x1b   :  { %v1044_v35 = vld [vmem:[#allocation2 + $0x40] sm:$0xff]   ;;  %v1047_v38 = vld [vmem:[#allocation2 + $0x8] sm:$0xff]   ;;  %v1048_v39 = vld [vmem:[#allocation2 + $0x50] sm:$0xff]  }
  0x1c   :  { %958 = vmatmul.mubr.msk.bf16.vlgmr.msra.gmra.mrb[0].mxu0 %vm95_vm1, %v1015_v4  ;;  %v1045_v36 = vld [vmem:[#allocation2] sm:$0xff]   ;;  %v1049_v40 = vld [vmem:[#allocation2 + $0x10] sm:$0xff]   ;;  %v1050_v41 = vld [vmem:[#allocation2 + $0x58] sm:$0xff]   ;;  %v249_v4 = vshrl.u32 %v248_v3, 7 }
  0x1d   :  { %966 = vmatpush3.bf16.msra.mxu1 %v1018_v6  ;;  %339 = vmatpush1.bf16.msra.mxu0 %v1020_v8  ;;  %v1051_v42 = vld [vmem:[#allocation2 + $0x18] sm:$0xff]   ;;  %v1052_v43 = vld [vmem:[#allocation2 + $0x60] sm:$0xff]   ;;  %v1054_v45 = vld [vmem:[#allocation2 + $0x68] sm:$0xff]  }
  0x1e   :  { %967 = vmatprep.subr.bf16.mxu1 %v1105_v0  ;;  %340 = vmatprep.subr.bf16.mxu0 %v1025_v10  ;;  %v1053_v44 = vld [vmem:[#allocation2 + $0x20] sm:$0xff]   ;;  %v1055_v56 = vld [vmem:[#allocation2 + $0x28] sm:$0xff]   ;;  %v1056_v57 = vld [vmem:[#allocation2 + $0x70] sm:$0xff]   ;;  %v250_v5 = vsub.s32 0, %v249_v4 }
  0x1f   :  { %370 = vmatprep.mubr.bf16.mxu0 %v1107_v34  ;;  %v855_v46 = vld [vmem:[%s1368_s4] ss:$0 sm:$0xff]  ;;  %v1057_v58 = vld [vmem:[#allocation2 + $0x30] sm:$0xff]   ;;  %v1058_v59 = vld [vmem:[#allocation2 + $0x78] sm:$0xff]  }
  0x20   :  { %v1059_v60 = vld [vmem:[#allocation2 + $0x38] sm:$0xff]   ;;  %v1060_v61 = vld [vmem:[%s1373_s9] sm:$0xff]   ;;  %v1061_v62 = vld [vmem:[%s1373_s9 + $0x8] sm:$0xff]  }
  0x21   :  { %968 = vmatpush3.bf16.msra.mxu1 %v1019_v7  ;;  %341 = vmatpush1.bf16.msra.mxu0 %v1023_v11  ;;  %v1062_v63 = vld [vmem:[%s1373_s9 + $0x10] sm:$0xff]   ;;  %v1063_v1 = vld [vmem:[%s1373_s9 + $0x18] sm:$0xff]   ;;  %v1064_v2 = vld [vmem:[%s1373_s9 + $0x20] sm:$0xff]   ;;  %v254_v7 = vsub.s32 1, %v249_v4 }
  0x22   :  { %342 = vmatprep.subr.bf16.mxu0 %v1028_v12  ;;  %917 = vmatprep.subr.bf16.mxu1 %v1044_v35  ;;  %v246_v6 = vld [vmem:[%s1370_s6] sm:$0x3] }
  0x23   :  { %v251_v8 = vrot.slane %v246_v6, %v250_v5  ;;  %v255_v9 = vrot.slane %v246_v6, %v254_v7  ;;  %v907_v5 = vld [vmem:[%s1378_s14] ss:$0 sm:$0xff] }
  0x25   :  { %343 = vmatpush1.bf16.msra.mxu0 %v1026_v13 }
  0x26   :  { %344 = vmatprep.subr.bf16.mxu0 %v1031_v14 }
  0x29   :  { %345 = vmatpush1.bf16.msra.mxu0 %v1029_v15 }
  0x2a   :  { %346 = vmatprep.subr.bf16.mxu0 %v1034_v16 }
  0x2d   :  { %347 = vmatpush1.bf16.msra.mxu0 %v1032_v17 }
  0x2e   :  { %348 = vmatprep.subr.bf16.mxu0 %v1037_v18 }
  0x31   :  { %349 = vmatpush1.bf16.msra.mxu0 %v1035_v19 }
  0x32   :  { %350 = vmatprep.subr.bf16.mxu0 %v1040_v30 }
  0x35   :  { %351 = vmatpush1.bf16.msra.mxu0 %v1038_v31 }
  0x36   :  { %352 = vmatprep.subr.bf16.mxu0 %v1043_v32 }
  0x39   :  { %353 = vmatpush1.bf16.msra.mxu0 %v1041_v33 }
  0x3a   :  { %973 = vmatprep.subr.bf16.mxu0 %v1105_v0 }
  0xef   :  { %v133_v21 = vpop.f32.mrb[0].mxu0 }
  0xf0   :  { %v134_v22 = vadd.f32 %v850_v20, %v133_v21  ;;  %v959_v23 = vpop.f32.mrb[1].mxu0 }
  0xf1   :  { %v136_v24 = vpop.f32.mrb[2].mxu0 }
  0xf2   :  { %v137_v25 = vadd.f32 %v850_v20, %v136_v24  ;;  %v960_v26 = vpop.f32.mrb[3].mxu0  ;;  %v140_v27 = vmax.f32 %v134_v22, 0.0  ;;  %v1065_v24 = vld [vmem:[%s1373_s9 + $0x28] sm:$0xff]  }
  0xf3   :  { %v1067_v26 = vld [vmem:[%s1373_s9 + $0x38] sm:$0xff]  }
  0xf4   :  { %v141_v28 = vmax.f32 %v137_v25, 0.0  ;;  %v1066_v25 = vld [vmem:[%s1373_s9 + $0x30] sm:$0xff]  }
  0xf6   :  { %v142_v29 = vpack.c.bf16 %v141_v28, %v140_v27  ;;  %v877_v28 = vld [vmem:[%s1372_s8] ss:$0 sm:$0xff] }
  0xf8   :  { %970 = vmatmul.mubr.msk.bf16.vlgmr.msra.gmra.mrb[0].mxu1 %vm182_vm2, %v142_v29 }
  0xf9   :  { %918 = vmatpush3.bf16.msra.mxu1 %v1045_v36 }
  0xfa   :  { %919 = vmatprep.subr.bf16.mxu1 %v1046_v37 }
  0xfd   :  { %920 = vmatpush3.bf16.msra.mxu1 %v1047_v38 }
  0xfe   :  { %921 = vmatprep.subr.bf16.mxu1 %v1048_v39 }
 0x101   :  { %922 = vmatpush3.bf16.msra.mxu1 %v1049_v40 }
 0x102   :  { %923 = vmatprep.subr.bf16.mxu1 %v1050_v41  ;;  %v1068_v41 = vld [vmem:[%s1375_s11] sm:$0xff]  }
 0x105   :  { %924 = vmatpush3.bf16.msra.mxu1 %v1051_v42  ;;  %v1069_v42 = vld [vmem:[%s1375_s11 + $0x8] sm:$0xff]  }
 0x106   :  { %925 = vmatprep.subr.bf16.mxu1 %v1052_v43  ;;  %v894_v43 = vld [vmem:[%s1374_s10] ss:$0 sm:$0xff] }
 0x109   :  { %926 = vmatpush3.bf16.msra.mxu1 %v1053_v44 }
 0x10a   :  { %927 = vmatprep.subr.bf16.mxu1 %v1054_v45 }
 0x10d   :  { %928 = vmatpush3.bf16.msra.mxu1 %v1055_v56 }
 0x10e   :  { %929 = vmatprep.subr.bf16.mxu1 %v1056_v57  ;;  %v903_v57 = vld [vmem:[%s1376_s12] ss:$0 sm:$0xff] }
 0x111   :  { %930 = vmatpush3.bf16.msra.mxu1 %v1057_v58 }
 0x112   :  { %931 = vmatprep.subr.bf16.mxu1 %v1058_v59 }
 0x115   :  { %932 = vmatpush3.bf16.msra.mxu1 %v1059_v60 }
 0x116   :  { %993 = vmatprep.subr.bf16.mxu1 %v1105_v0 }
 0x1cb   :  { %v220_v47 = vpop.f32.mrb[0].mxu1 }
 0x1cc   :  { %v221_v48 = vadd.f32 %v855_v46, %v220_v47  ;;  %v971_v49 = vpop.f32.mrb[1].mxu1 }
 0x1cd   :  { %v223_v50 = vpop.f32.mrb[2].mxu1 }
 0x1ce   :  { %v224_v51 = vadd.f32 %v855_v46, %v223_v50  ;;  %v972_v52 = vpop.f32.mrb[3].mxu1  ;;  %v227_v53 = vmax.f32 %v221_v48, 0.0 }
 0x1d0   :  { %v228_v54 = vmax.f32 %v224_v51, 0.0 }
 0x1d2   :  { %v229_v55 = vpack.c.bf16 %v228_v54, %v227_v53 }
 0x1d4   :  { %371 = vmatmul.mubr.bf16.vlgmr.msra.gmra.mrb[4].mxu0 %v229_v55  ;;  %v763_v55 = vld [vmem:[%s1377_s13] sm:$0x3] }
 0x1d5   :  { %989 = vmatprep.mubr.msk.bf16.mxu0 %vm1106_vm0, %v1105_v0  ;;  %974 = vmatpush3.bf16.msra.mxu0 %v1060_v61  ;;  %v777_v56 = vsel %vm775_vm7, %v763_v55, 0 }
 0x1d6   :  { %975 = vmatprep.subr.bf16.mxu0 %v1105_v0 }
 0x1d9   :  { %976 = vmatpush3.bf16.msra.mxu0 %v1061_v62 }
 0x1da   :  { %977 = vmatprep.subr.bf16.mxu0 %v1105_v0 }
 0x1dd   :  { %978 = vmatpush3.bf16.msra.mxu0 %v1062_v63 }
 0x1de   :  { %979 = vmatprep.subr.bf16.mxu0 %v1105_v0 }
 0x1e1   :  { %980 = vmatpush3.bf16.msra.mxu0 %v1063_v1 }
 0x1e2   :  { %981 = vmatprep.subr.bf16.mxu0 %v1105_v0 }
 0x1e5   :  { %982 = vmatpush3.bf16.msra.mxu0 %v1064_v2 }
 0x1e6   :  { %983 = vmatprep.subr.bf16.mxu0 %v1105_v0 }
 0x1e9   :  { %984 = vmatpush3.bf16.msra.mxu0 %v1065_v24 }
 0x1ea   :  { %985 = vmatprep.subr.bf16.mxu0 %v1105_v0 }
 0x1ed   :  { %986 = vmatpush3.bf16.msra.mxu0 %v1066_v25 }
 0x1ee   :  { %987 = vmatprep.subr.bf16.mxu0 %v1105_v0 }
 0x1f1   :  { %988 = vmatpush3.bf16.msra.mxu0 %v1067_v26 }
 0x2a7   :  { %v372_v10 = vpop.f32.mrb[4].mxu0 }
 0x2a8   :  { %v373_v11 = vadd.f32 %v372_v10, %v251_v8  ;;  %v374_v12 = vpop.f32.mrb[5].mxu0 }
 0x2a9   :  { %v375_v13 = vadd.f32 %v374_v12, %v255_v9  ;;  %v376_v14 = vpop.f32.mrb[6].mxu0 }
 0x2aa   :  { %v377_v15 = vadd.f32 %v376_v14, %v251_v8  ;;  %v378_v16 = vpop.f32.mrb[7].mxu0  ;;  %v381_v18 = vmax.f32 %v373_v11, 0.0 }
 0x2ab   :  { %v379_v17 = vadd.f32 %v378_v16, %v255_v9  ;;  %v382_v20 = vmax.f32 %v375_v13, 0.0 }
 0x2ac   :  { %v383_v19 = vmax.f32 %v377_v15, 0.0 }
 0x2ad   :  { %v384_v21 = vmax.f32 %v379_v17, 0.0 }
 0x2ae   :  { %v385_v22 = vpack.c.bf16 %v383_v19, %v381_v18 }
 0x2af   :  { %v386_v23 = vpack.c.bf16 %v384_v21, %v382_v20 }
 0x2b1   :  { %554 = vmatprep.mubr.bf16.mxu1 %v386_v23 }
 0x2b2   :  { %555 = vmatmul.mubr.bf16.vlgmr.msra.gmra.mrb[4].mxu1 %v385_v22 }
 0x2b3   :  { %997 = vmatprep.mubr.msk.bf16.mxu1 %vm1106_vm0, %v1105_v0  ;;  %994 = vmatpush3.bf16.msra.mxu1 %v1068_v41 }
 0x2b4   :  { %995 = vmatprep.subr.bf16.mxu1 %v1105_v0 }
 0x2b7   :  { %996 = vmatpush3.bf16.msra.mxu1 %v1069_v42 }
 0x2b8   :  { %1001 = vmatprep.subr.bf16.mxu1 %v1105_v0 }
 0x385   :  { %v933_v27 = vpop.f32.mrb[4].mxu1 }
 0x386   :  { %v934_v29 = vpop.f32.mrb[5].mxu1 }
 0x387   :  { %v935_v30 = vadd.f32 %v934_v29, %v933_v27  ;;  %v936_v31 = vpop.f32.mrb[6].mxu1 }
 0x388   :  { %v937_v32 = vpop.f32.mrb[7].mxu1 }
 0x389   :  { %v557_v33 = vadd.f32 %v935_v30, %v877_v28  ;;  %v938_v34 = vadd.f32 %v937_v32, %v936_v31 }
 0x38b   :  { %v565_v35 = vmul.f32 0.01, %v557_v33  ;;  %v560_v36 = vadd.f32 %v938_v34, %v877_v28  ;;  %vm563_vm3 = vcmp.gt.f32.partialorder %v557_v33, 0.0 }
 0x38d   :  { %vm564_vm4 = vcmp.gt.f32.partialorder %v560_v36, 0.0  ;;  %v566_v37 = vmul.f32 0.01, %v560_v36  ;;  %v567_v38 = vsel %vm563_vm3, %v557_v33, %v565_v35 }
 0x38f   :  { %v568_v39 = vsel %vm564_vm4, %v560_v36, %v566_v37 }
 0x390   :  { %v569_v40 = vpack.c.bf16 %v568_v39, %v567_v38 }
 0x392   :  { %990 = vmatmul.mubr.bf16.vlgmr.msra.gmra.mrb[8].mxu0 %v569_v40 }
 0x465   :  { %v675_v44 = vpop.f32.mrb[8].mxu0 }
 0x466   :  { %v676_v45 = vadd.f32 %v894_v43, %v675_v44  ;;  %v991_v46 = vpop.f32.mrb[9].mxu0 }
 0x467   :  { %v678_v47 = vpop.f32.mrb[10].mxu0 }
 0x468   :  { %v684_v48 = vmul.f32 0.01, %v676_v45  ;;  %v679_v49 = vadd.f32 %v894_v43, %v678_v47  ;;  %v992_v50 = vpop.f32.mrb[11].mxu0  ;;  %vm682_vm5 = vcmp.gt.f32.partialorder %v676_v45, 0.0 }
 0x46a   :  { %vm683_vm6 = vcmp.gt.f32.partialorder %v679_v49, 0.0  ;;  %v685_v51 = vmul.f32 0.01, %v679_v49  ;;  %v686_v52 = vsel %vm682_vm5, %v676_v45, %v684_v48 }
 0x46c   :  { %v687_v53 = vsel %vm683_vm6, %v679_v49, %v685_v51 }
 0x46d   :  { %v688_v54 = vpack.c.bf16 %v687_v53, %v686_v52 }
 0x46f   :  { %998 = vmatmul.mubr.msk.bf16.vlgmr.msra.gmra.mrb[8].mxu1 %vm95_vm1, %v688_v54 }
 0x470   :  { %1003 = vmatprep.mubr.msk.bf16.mxu1 %vm1106_vm0, %v1105_v0  ;;  %1002 = vmatpush3.bf16.msra.mxu1 %v777_v56 }
 0x542   :  { %v749_v58 = vpop.f32.mrb[8].mxu1 }
 0x543   :  { %v750_v59 = vadd.f32 %v903_v57, %v749_v58  ;;  %v999_v60 = vpop.f32.mrb[9].mxu1 }
 0x544   :  { %v752_v61 = vpop.f32.mrb[10].mxu1 }
 0x545   :  { %v758_v62 = vmul.f32 0.01, %v750_v59  ;;  %v753_v63 = vadd.f32 %v903_v57, %v752_v61  ;;  %v1000_v1 = vpop.f32.mrb[11].mxu1  ;;  %vm756_vm8 = vcmp.gt.f32.partialorder %v750_v59, 0.0 }
 0x547   :  { %vm757_vm9 = vcmp.gt.f32.partialorder %v753_v63, 0.0  ;;  %v759_v0 = vmul.f32 0.01, %v753_v63  ;;  %v760_v2 = vsel %vm756_vm8, %v750_v59, %v758_v62 }
 0x549   :  { %v761_v3 = vsel %vm757_vm9, %v753_v63, %v759_v0 }
 0x54a   :  { %v762_v4 = vpack.c.bf16 %v761_v3, %v760_v2 }
 0x54c   :  { %1004 = vmatmul.mubr.msk.bf16.vlgmr.msra.gmra.mrb[12].mxu1 %vm771_vm10, %v762_v4 }
 0x61f   :  { %v813_v6 = vpop.f32.mrb[12].mxu1 }
 0x620   :  { %v814_v7 = vadd.f32 %v907_v5, %v813_v6  ;;  %v1005_v8 = vpop.f32.mrb[13].mxu1 }
 0x621   :  { %v816_v9 = vpop.f32.mrb[14].mxu1 }
 0x622   :  { %v817_v10 = vadd.f32 %v907_v5, %v816_v9  ;;  %v1006_v11 = vpop.f32.mrb[15].mxu1  ;;  %v821_v12 = vsel %vm820_vm11, %v814_v7, -inf }
 0x623   :  { %822 = vmax.xlane.f32.xlu0 %v821_v12 }
 0x624   :  { %v824_v13 = vsel %vm820_vm11, %v817_v10, -inf }
 0x627   :  { %825 = vmax.xlane.f32.xlu0 %v824_v13 }
 0x6b0   :  { %v823_v14 = vpop.xlane.xlu0 %822 }
 0x6b1   :  { %v827_v15 = vsub.f32 %v814_v7, %v823_v14 }
 0x6b3   :  { %v829_v16 = vmul.f32 1.442695, %v827_v15 }
 0x6b4   :  { %v826_v17 = vpop.xlane.xlu0 %825 }
 0x6b5   :  { %1070 = vpow2.f32 %v829_v16  ;;  %v828_v18 = vsub.f32 %v817_v10, %v826_v17 }
 0x6b7   :  { %v831_v19 = vmul.f32 1.442695, %v828_v18 }
 0x6b9   :  { %1072 = vpow2.f32 %v831_v19 }
 0x6bf   :  { %v1071_v20 = vpop.eup %1070 }
 0x6c0   :  { %v833_v21 = vsel %vm820_vm11, %v1071_v20, 0.0 }
 0x6c1   :  { %834 = vadd.xlane.f32.xlu1 %v833_v21 }
 0x6c3   :  { %v1073_v22 = vpop.eup %1072 }
 0x6c4   :  { %v836_v23 = vsel %vm820_vm11, %v1073_v22, 0.0 }
 0x6c5   :  { %837 = vadd.xlane.f32.xlu1 %v836_v23 }
 0x74e   :  { %v835_v24 = vpop.xlane.xlu1 %834 }
 0x74f   :  { %1074 = vrcp.f32 %v835_v24 }
 0x752   :  { %v838_v25 = vpop.xlane.xlu1 %837 }
 0x753   :  { %1076 = vrcp.f32 %v838_v25 }
 0x759   :  { %v1075_v26 = vpop.eup %1074 }
 0x75a   :  { %v840_v27 = vmul.f32 %v1075_v26, %v1071_v20 }
 0x75c   :  { %843 = vst.msk [vmem:[%s1379_s15] sm:$0xff] %vm820_vm11, %v840_v27 }
 0x75d   :  { %v1077_v28 = vpop.eup %1076 }
 0x75e   :  { %v842_v29 = vmul.f32 %v1077_v28, %v1073_v22 }
 0x760   :  { %844 = vst.msk [vmem:[%s1379_s15 + $0x8] sm:$0xff] %vm820_vm11, %v842_v29 }
 0x761   :  { %849 = vsyncpa [#allocation3], 1 }

</bundles_post_ra>
